<compile_context>
chip_gen: v6e
topology: v6e:2x2x1
jax: 0.10.0
libtpu: 0.0.40
codegen_flags: <defaults>
</compile_context>

<pallas_src>
import functools

import numpy as np
import jax
import jax.numpy as jnp
from jax.experimental import pallas as pl
from jax.experimental.pallas import tpu as pltpu


# ------------------------------ fused kernel --------------------------------

def _patch_embed_kernel(x_ref, t_ref, b1_ref, gb_ref, wim_ref, b2_ref, o_ref,
                        *, n_batch, img_h, n_ch1, w1_len):
    """Fused conv1 (Toeplitz matmul) + BN(train) + LeakyReLU + conv2 (im2col matmul).

    x_ref  : (B*H, W)            f32 VMEM  input rows (Cin == 1)
    t_ref  : (W, CWpad)          f32 VMEM  Toeplitz conv1 weight, lanes >= C1*W1 zero
    b1_ref : (1, CWpad)          f32 VMEM  conv1 bias tiled per channel (pad lanes 0)
    gb_ref : (2, C1)             f32 SMEM  rows = [BN gamma, BN beta]
    wim_ref: (KH2*CWpad, NEpad)  f32 VMEM  block-diagonal conv2 weight (N padded to 128)
    b2_ref : (1, NEpad)          f32 VMEM  conv2 bias tiled over W2 (pad lanes 0)
    o_ref  : (B*H2, NEpad)       f32 VMEM  output; wrapper slices [:, :W2*E]
    """
    B, H, C1, W1 = n_batch, img_h, n_ch1, w1_len
    BH = x_ref.shape[0]
    CWpad = t_ref.shape[1]
    KH2 = wim_ref.shape[0] // CWpad
    H2 = H - KH2 + 1
    L = BH - KH2 + 1                      # rows of the "all-rows" conv2 result
    inv_n = 1.0 / float(BH * W1)

    # ---- conv1 (1 x KW1, stride 1): one Toeplitz MXU matmul -----------------
    y = jnp.dot(x_ref[...], t_ref[...], preferred_element_type=jnp.float32)
    y = y + b1_ref[...]                   # (BH, CWpad); padded lanes stay 0

    # ---- BatchNorm2d (training: batch stats, biased var) + LeakyReLU(0.2) ---
    # Fused single-pass stats; applied via per-lane scale/shift vectors so the
    # two channels never get split / re-concatenated.
    lane = jax.lax.broadcasted_iota(jnp.int32, (1, CWpad), 1)
    scale_vec = jnp.zeros((1, CWpad), jnp.float32)
    shift_vec = jnp.zeros((1, CWpad), jnp.float32)
    for c in range(C1):
        yc = y[:, c * W1:(c + 1) * W1]
        s1 = jnp.sum(jnp.sum(yc, axis=1, keepdims=True), axis=0, keepdims=True)
        s2 = jnp.sum(jnp.sum(yc * yc, axis=1, keepdims=True), axis=0, keepdims=True)
        mean = s1 * inv_n                                        # (1, 1)
        var = s2 * inv_n - mean * mean                           # (1, 1)
        scale_c = gb_ref[0, c] * jax.lax.rsqrt(var + 1e-5)       # gamma / std
        shift_c = gb_ref[1, c] - mean * scale_c                  # beta - mean*scale
        in_c = (lane >= c * W1) & (lane < (c + 1) * W1)
        scale_vec = jnp.where(in_c, scale_c, scale_vec)
        shift_vec = jnp.where(in_c, shift_c, shift_vec)
    z = y * scale_vec + shift_vec          # padded lanes: scale = shift = 0 -> 0
    z = jnp.where(z > 0, z, 0.2 * z)       # LeakyReLU(0.2); leaky(0) = 0

    # ---- conv2 (KH2 x KW2, stride (1, KW2)): single im2col MXU matmul -------
    # lhs[s, kh*CWpad + c*W1 + w2*KW2 + kw] = z[s + kh, c*W1 + w2*KW2 + kw]
    # Pieces are full 128-lane blocks -> the lane concat is 128-aligned.
    lhs = jnp.concatenate([z[kh:kh + L, :] for kh in range(KH2)], axis=1)
    r = jnp.dot(lhs, wim_ref[...], preferred_element_type=jnp.float32)
    r = r + b2_ref[...]                    # (L, NEpad), lane-dense

    # keep only rows s = b*H + h2 with h2 < H2 (windows fully inside one image):
    # one gather/concat + ONE contiguous lane-dense store.
    if B == 1:
        o_ref[...] = r[:H2, :]
    else:
        o_ref[...] = jnp.concatenate(
            [r[b * H:b * H + H2, :] for b in range(B)], axis=0)


# -------------------------------- wrapper ------------------------------------

def _round_up(n, m):
    return (n + m - 1) // m * m


def patch_embedding_forward(x, params):
    """x: (B, 1, H, W) float32 (PyTorch NCHW). Returns (B, H2*W2, emb_size)."""
    w1, b1 = params["w1"], params["b1"]            # (C1,1,1,51), (C1,)
    gamma, beta = params["gamma"], params["beta"]  # (C1,), (C1,)
    w2, b2 = params["w2"], params["b2"]            # (E,C1,12,10), (E,)

    B, Cin, H, W = x.shape
    assert Cin == 1
    C1, _, _, KW1 = w1.shape                       # 2, 1, 1, 51
    E, _, KH2, KW2 = w2.shape                      # emb, 2, 12, 10
    SW2 = 10                                       # conv2 width stride
    assert KW2 == SW2, "block-diagonal conv2 relies on stride == kernel width"

    W1 = W - KW1 + 1
    H2 = H - KH2 + 1
    W2 = (W1 - KW2) // SW2 + 1
    TW = W2 * KW2                                  # lanes consumed by conv2 / channel
    NE = W2 * E
    CW = C1 * W1
    CWpad = _round_up(CW, 128)                     # lane-dense conv1 activation width
    NEpad = _round_up(NE, 128)                     # lane-dense conv2 output width
    BH = B * H
    L = BH - KH2 + 1
    f32 = jnp.float32

    # ---- layout-only glue (weights / tiny params; no activation traffic) ----
    x2d = x.reshape(BH, W).astype(f32)

    # Toeplitz conv1 weight: T[w, c*W1 + w1] = w1[c, w - w1] (0 <= w - w1 < KW1)
    w1s = w1.reshape(C1, KW1).astype(f32)
    widx = jnp.arange(W)[:, None] - jnp.arange(W1)[None, :]          # (W, W1)
    vmask = (widx >= 0) & (widx < KW1)
    t_per_c = jnp.where(vmask[None], w1s[:, jnp.clip(widx, 0, KW1 - 1)], 0.0)
    tmat = jnp.zeros((W, CWpad), f32)
    for c in range(C1):
        tmat = tmat.at[:, c * W1:(c + 1) * W1].set(t_per_c[c])

    # conv1 bias, tiled per channel (training-mode BN cancels it exactly, kept
    # for faithfulness; padded lanes stay zero)
    b1row = jnp.zeros((1, CWpad), f32)
    for c in range(C1):
        b1row = b1row.at[0, c * W1:(c + 1) * W1].set(b1[c])

    gb = jnp.stack([gamma, beta]).astype(f32)                         # (2, C1)

    # block-diagonal conv2 weight for the single im2col matmul:
    # wim[kh*CWpad + c*W1 + u*KW2 + kw, v*E + e] = delta(u, v) * w2[e, c, kh, kw]
    w2t = jnp.transpose(w2, (2, 1, 3, 0)).astype(f32)                 # (KH2,C1,KW2,E)
    eye = jnp.eye(W2, dtype=f32)
    blk = jnp.einsum('uv,kcje->kcujve', eye, w2t).reshape(KH2, C1, TW, NE)
    wim = jnp.zeros((KH2, CWpad, NEpad), f32)
    for c in range(C1):
        wim = wim.at[:, c * W1:c * W1 + TW, :NE].set(blk[:, c])
    wim = wim.reshape(KH2 * CWpad, NEpad)

    b2row = jnp.zeros((1, NEpad), f32).at[0, :NE].set(
        jnp.tile(b2.astype(f32), W2))

    kernel = functools.partial(_patch_embed_kernel, n_batch=B, img_h=H,
                               n_ch1=C1, w1_len=W1)

    # ---- resource / cost accounting (vmem limit from actual buffer sizes) ---
    io_bytes = 4 * (x2d.size + tmat.size + b1row.size + gb.size + wim.size
                    + b2row.size + B * H2 * NEpad)
    inter_bytes = 4 * (2 * BH * CWpad + L * KH2 * CWpad + L * NEpad)
    vmem_limit = int(min(2 * (io_bytes + inter_bytes) + (8 << 20), 100 << 20))
    flops = 2 * BH * W * CWpad + 2 * L * (KH2 * CWpad) * NEpad

    out2d = pl.pallas_call(
        kernel,
        out_shape=jax.ShapeDtypeStruct((B * H2, NEpad), jnp.float32),
        in_specs=[
            pl.BlockSpec(memory_space=pltpu.MemorySpace.VMEM),   # x rows
            pl.BlockSpec(memory_space=pltpu.MemorySpace.VMEM),   # Toeplitz conv1 W
            pl.BlockSpec(memory_space=pltpu.MemorySpace.VMEM),   # conv1 bias row
            pl.BlockSpec(memory_space=pltpu.MemorySpace.SMEM),   # gamma / beta
            pl.BlockSpec(memory_space=pltpu.MemorySpace.VMEM),   # conv2 im2col W
            pl.BlockSpec(memory_space=pltpu.MemorySpace.VMEM),   # conv2 bias row
        ],
        out_specs=pl.BlockSpec(memory_space=pltpu.MemorySpace.VMEM),
        compiler_params=pltpu.CompilerParams(vmem_limit_bytes=vmem_limit),
        cost_estimate=pl.CostEstimate(flops=flops, transcendentals=C1,
                                      bytes_accessed=io_bytes),
    )(x2d, tmat, b1row, gb, wim, b2row)

    # (B*H2, NEpad) -> drop lane padding -> (B, H2*W2, E); rows are (b, h2),
    # columns are (w2, e): matches Rearrange('b e h w -> b (h w) e').
    return out2d[:, :NE].reshape(B, H2, W2, E).reshape(B, H2 * W2, E)


# ---------------------------- pure-JAX reference -----------------------------

def reference(x, params):
    w1, b1 = params["w1"], params["b1"]
    gamma, beta = params["gamma"], params["beta"]
    w2, b2 = params["w2"], params["b2"]
    dn = ("NCHW", "OIHW", "NCHW")
    y = jax.lax.conv_general_dilated(x, w1, (1, 1), "VALID", dimension_numbers=dn)
    y = y + b1[None, :, None, None]
    mean = y.mean(axis=(0, 2, 3), keepdims=True)
    var = ((y - mean) ** 2).mean(axis=(0, 2, 3), keepdims=True)
    y = (y - mean) / jnp.sqrt(var + 1e-5)
    y = y * gamma[None, :, None, None] + beta[None, :, None, None]
    y = jnp.where(y > 0, y, 0.2 * y)
    y = jax.lax.conv_general_dilated(y, w2, (1, 10), "VALID", dimension_numbers=dn)
    y = y + b2[None, :, None, None]
    B, E, H2, W2 = y.shape
    return y.transpose(0, 2, 3, 1).reshape(B, H2 * W2, E)


# ----------------------------------- main ------------------------------------

if __name__ == "__main__":
    key = jax.random.PRNGKey(0)
    ks = jax.random.split(key, 7)

    B, H, W = 2, 13, 110     # H >= 12, W >= 60 required by the conv kernels
    E = 16                   # emb_size

    x = jax.random.normal(ks[0], (B, 1, H, W), jnp.float32)
    params = {
        "w1": 0.1 * jax.random.normal(ks[1], (2, 1, 1, 51), jnp.float32),
        "b1": 0.1 * jax.random.normal(ks[2], (2,), jnp.float32),
        "gamma": 1.0 + 0.1 * jax.random.normal(ks[3], (2,), jnp.float32),
        "beta": 0.1 * jax.random.normal(ks[4], (2,), jnp.float32),
        "w2": 0.1 * jax.random.normal(ks[5], (E, 2, 12, 10), jnp.float32),
        "b2": 0.1 * jax.random.normal(ks[6], (E,), jnp.float32),
    }

    out = jax.jit(patch_embedding_forward)(x, params)
    out = jax.block_until_ready(out)

    ref = reference(x, params)
    H2 = H - 12 + 1
    W2 = ((W - 51 + 1) - 10) // 10 + 1
    assert out.shape == (B, H2 * W2, E), out.shape
    np.testing.assert_allclose(np.asarray(out), np.asarray(ref), rtol=5e-4, atol=5e-4)

    print("KERNEL_OK")
</pallas_src>

<mosaic_0001>
module attributes {stable_mosaic.version = 11 : i64} {
  func.func @_patch_embed_kernel(%arg0: memref<26x110xf32, #tpu.memory_space<vmem>>, %arg1: memref<110x128xf32, #tpu.memory_space<vmem>>, %arg2: memref<1x128xf32, #tpu.memory_space<vmem>>, %arg3: memref<2x2xf32, #tpu.memory_space<smem>>, %arg4: memref<1536x128xf32, #tpu.memory_space<vmem>>, %arg5: memref<1x128xf32, #tpu.memory_space<vmem>>, %arg6: memref<4x128xf32, #tpu.memory_space<vmem>>) attributes {dimension_semantics = [], scalar_prefetch = 0 : i64, scratch_operands = 0 : i64, tpu.core_type = #tpu.core_type<tc>} {
    %c0 = arith.constant 0 : index
    %c0_0 = arith.constant 0 : index
    %0 = vector.load %arg0[%c0, %c0_0] : memref<26x110xf32, #tpu.memory_space<vmem>>, vector<26x110xf32>
    %c0_1 = arith.constant 0 : index
    %c0_2 = arith.constant 0 : index
    %1 = vector.load %arg1[%c0_1, %c0_2] : memref<110x128xf32, #tpu.memory_space<vmem>>, vector<110x128xf32>
    %cst = arith.constant dense<0.000000e+00> : vector<26x128xf32>
    %2 = tpu.matmul %0, %1, %cst {dimension_numbers = #tpu.dot_dimension_numbers<[1], [0], [0], [1], [0, 0, 1, 1], [], []>} : vector<26x110xf32>, vector<110x128xf32>, vector<26x128xf32> -> vector<26x128xf32>
    %c0_3 = arith.constant 0 : index
    %c0_4 = arith.constant 0 : index
    %3 = vector.load %arg2[%c0_3, %c0_4] : memref<1x128xf32, #tpu.memory_space<vmem>>, vector<1x128xf32>
    %4 = vector.broadcast %3 : vector<1x128xf32> to vector<26x128xf32>
    %5 = arith.addf %2, %4 : vector<26x128xf32>
    %6 = tpu.iota {dimensions = array<i32: 1>} : vector<1x128xi32>
    %cst_5 = arith.constant 0.000000e+00 : f32
    %7 = vector.broadcast %cst_5 : f32 to vector<1x128xf32>
    %cst_6 = arith.constant 0.000000e+00 : f32
    %8 = vector.broadcast %cst_6 : f32 to vector<1x128xf32>
    %9 = vector.extract_strided_slice %5 {offsets = [0, 0], sizes = [26, 60], strides = [1, 1]} : vector<26x128xf32> to vector<26x60xf32>
    %cst_7 = arith.constant dense<0.000000e+00> : vector<26xf32>
    %10 = vector.multi_reduction <add>, %9, %cst_7 [1] : vector<26x60xf32> to vector<26xf32>
    %11 = vector.shape_cast %10 : vector<26xf32> to vector<26x1xf32>
    %cst_8 = arith.constant dense<0.000000e+00> : vector<1xf32>
    %12 = vector.multi_reduction <add>, %11, %cst_8 [0] : vector<26x1xf32> to vector<1xf32>
    %13 = vector.shape_cast %12 : vector<1xf32> to vector<1x1xf32>
    %14 = arith.mulf %9, %9 : vector<26x60xf32>
    %cst_9 = arith.constant dense<0.000000e+00> : vector<26xf32>
    %15 = vector.multi_reduction <add>, %14, %cst_9 [1] : vector<26x60xf32> to vector<26xf32>
    %16 = vector.shape_cast %15 : vector<26xf32> to vector<26x1xf32>
    %cst_10 = arith.constant dense<0.000000e+00> : vector<1xf32>
    %17 = vector.multi_reduction <add>, %16, %cst_10 [0] : vector<26x1xf32> to vector<1xf32>
    %18 = vector.shape_cast %17 : vector<1xf32> to vector<1x1xf32>
    %cst_11 = arith.constant 6.41025661E-4 : f32
    %19 = vector.broadcast %cst_11 : f32 to vector<1x1xf32>
    %20 = arith.mulf %13, %19 : vector<1x1xf32>
    %cst_12 = arith.constant 6.41025661E-4 : f32
    %21 = vector.broadcast %cst_12 : f32 to vector<1x1xf32>
    %22 = arith.mulf %18, %21 : vector<1x1xf32>
    %23 = arith.mulf %20, %20 : vector<1x1xf32>
    %24 = arith.subf %22, %23 : vector<1x1xf32>
    %c0_13 = arith.constant 0 : index
    %c0_14 = arith.constant 0 : index
    %25 = memref.load %arg3[%c0_13, %c0_14] : memref<2x2xf32, #tpu.memory_space<smem>>
    %cst_15 = arith.constant 9.99999974E-6 : f32
    %26 = vector.broadcast %cst_15 : f32 to vector<1x1xf32>
    %27 = arith.addf %24, %26 : vector<1x1xf32>
    %28 = math.rsqrt %27 : vector<1x1xf32>
    %29 = vector.broadcast %25 : f32 to vector<1x1xf32>
    %30 = arith.mulf %29, %28 : vector<1x1xf32>
    %c1 = arith.constant 1 : index
    %c0_16 = arith.constant 0 : index
    %31 = memref.load %arg3[%c1, %c0_16] : memref<2x2xf32, #tpu.memory_space<smem>>
    %32 = arith.mulf %20, %30 : vector<1x1xf32>
    %33 = vector.broadcast %31 : f32 to vector<1x1xf32>
    %34 = arith.subf %33, %32 : vector<1x1xf32>
    %c0_i32 = arith.constant 0 : i32
    %35 = vector.broadcast %c0_i32 : i32 to vector<1x128xi32>
    %36 = arith.cmpi sge, %6, %35 : vector<1x128xi32>
    %c60_i32 = arith.constant 60 : i32
    %37 = vector.broadcast %c60_i32 : i32 to vector<1x128xi32>
    %38 = arith.cmpi slt, %6, %37 : vector<1x128xi32>
    %39 = arith.andi %36, %38 : vector<1x128xi1>
    %40 = vector.shape_cast %30 : vector<1x1xf32> to vector<1x1xf32>
    %41 = vector.broadcast %40 : vector<1x1xf32> to vector<1x128xf32>
    %42 = arith.select %39, %41, %7 : vector<1x128xi1>, vector<1x128xf32>
    %43 = vector.shape_cast %34 : vector<1x1xf32> to vector<1x1xf32>
    %44 = vector.broadcast %43 : vector<1x1xf32> to vector<1x128xf32>
    %45 = arith.select %39, %44, %8 : vector<1x128xi1>, vector<1x128xf32>
    %46 = vector.extract_strided_slice %5 {offsets = [0, 60], sizes = [26, 60], strides = [1, 1]} : vector<26x128xf32> to vector<26x60xf32>
    %cst_17 = arith.constant dense<0.000000e+00> : vector<26xf32>
    %47 = vector.multi_reduction <add>, %46, %cst_17 [1] : vector<26x60xf32> to vector<26xf32>
    %48 = vector.shape_cast %47 : vector<26xf32> to vector<26x1xf32>
    %cst_18 = arith.constant dense<0.000000e+00> : vector<1xf32>
    %49 = vector.multi_reduction <add>, %48, %cst_18 [0] : vector<26x1xf32> to vector<1xf32>
    %50 = vector.shape_cast %49 : vector<1xf32> to vector<1x1xf32>
    %51 = arith.mulf %46, %46 : vector<26x60xf32>
    %cst_19 = arith.constant dense<0.000000e+00> : vector<26xf32>
    %52 = vector.multi_reduction <add>, %51, %cst_19 [1] : vector<26x60xf32> to vector<26xf32>
    %53 = vector.shape_cast %52 : vector<26xf32> to vector<26x1xf32>
    %cst_20 = arith.constant dense<0.000000e+00> : vector<1xf32>
    %54 = vector.multi_reduction <add>, %53, %cst_20 [0] : vector<26x1xf32> to vector<1xf32>
    %55 = vector.shape_cast %54 : vector<1xf32> to vector<1x1xf32>
    %cst_21 = arith.constant 6.41025661E-4 : f32
    %56 = vector.broadcast %cst_21 : f32 to vector<1x1xf32>
    %57 = arith.mulf %50, %56 : vector<1x1xf32>
    %cst_22 = arith.constant 6.41025661E-4 : f32
    %58 = vector.broadcast %cst_22 : f32 to vector<1x1xf32>
    %59 = arith.mulf %55, %58 : vector<1x1xf32>
    %60 = arith.mulf %57, %57 : vector<1x1xf32>
    %61 = arith.subf %59, %60 : vector<1x1xf32>
    %c0_23 = arith.constant 0 : index
    %c1_24 = arith.constant 1 : index
    %62 = memref.load %arg3[%c0_23, %c1_24] : memref<2x2xf32, #tpu.memory_space<smem>>
    %cst_25 = arith.constant 9.99999974E-6 : f32
    %63 = vector.broadcast %cst_25 : f32 to vector<1x1xf32>
    %64 = arith.addf %61, %63 : vector<1x1xf32>
    %65 = math.rsqrt %64 : vector<1x1xf32>
    %66 = vector.broadcast %62 : f32 to vector<1x1xf32>
    %67 = arith.mulf %66, %65 : vector<1x1xf32>
    %c1_26 = arith.constant 1 : index
    %c1_27 = arith.constant 1 : index
    %68 = memref.load %arg3[%c1_26, %c1_27] : memref<2x2xf32, #tpu.memory_space<smem>>
    %69 = arith.mulf %57, %67 : vector<1x1xf32>
    %70 = vector.broadcast %68 : f32 to vector<1x1xf32>
    %71 = arith.subf %70, %69 : vector<1x1xf32>
    %c60_i32_28 = arith.constant 60 : i32
    %72 = vector.broadcast %c60_i32_28 : i32 to vector<1x128xi32>
    %73 = arith.cmpi sge, %6, %72 : vector<1x128xi32>
    %c120_i32 = arith.constant 120 : i32
    %74 = vector.broadcast %c120_i32 : i32 to vector<1x128xi32>
    %75 = arith.cmpi slt, %6, %74 : vector<1x128xi32>
    %76 = arith.andi %73, %75 : vector<1x128xi1>
    %77 = vector.shape_cast %67 : vector<1x1xf32> to vector<1x1xf32>
    %78 = vector.broadcast %77 : vector<1x1xf32> to vector<1x128xf32>
    %79 = arith.select %76, %78, %42 : vector<1x128xi1>, vector<1x128xf32>
    %80 = vector.shape_cast %71 : vector<1x1xf32> to vector<1x1xf32>
    %81 = vector.broadcast %80 : vector<1x1xf32> to vector<1x128xf32>
    %82 = arith.select %76, %81, %45 : vector<1x128xi1>, vector<1x128xf32>
    %83 = vector.broadcast %79 : vector<1x128xf32> to vector<26x128xf32>
    %84 = arith.mulf %5, %83 : vector<26x128xf32>
    %85 = vector.broadcast %82 : vector<1x128xf32> to vector<26x128xf32>
    %86 = arith.addf %84, %85 : vector<26x128xf32>
    %cst_29 = arith.constant 0.000000e+00 : f32
    %87 = vector.broadcast %cst_29 : f32 to vector<26x128xf32>
    %88 = arith.cmpf ogt, %86, %87 : vector<26x128xf32>
    %cst_30 = arith.constant 2.000000e-01 : f32
    %89 = vector.broadcast %cst_30 : f32 to vector<26x128xf32>
    %90 = arith.mulf %89, %86 : vector<26x128xf32>
    %91 = arith.select %88, %86, %90 : vector<26x128xi1>, vector<26x128xf32>
    %92 = vector.extract_strided_slice %91 {offsets = [0, 0], sizes = [15, 128], strides = [1, 1]} : vector<26x128xf32> to vector<15x128xf32>
    %93 = vector.extract_strided_slice %91 {offsets = [1, 0], sizes = [15, 128], strides = [1, 1]} : vector<26x128xf32> to vector<15x128xf32>
    %94 = vector.extract_strided_slice %91 {offsets = [2, 0], sizes = [15, 128], strides = [1, 1]} : vector<26x128xf32> to vector<15x128xf32>
    %95 = vector.extract_strided_slice %91 {offsets = [3, 0], sizes = [15, 128], strides = [1, 1]} : vector<26x128xf32> to vector<15x128xf32>
    %96 = vector.extract_strided_slice %91 {offsets = [4, 0], sizes = [15, 128], strides = [1, 1]} : vector<26x128xf32> to vector<15x128xf32>
    %97 = vector.extract_strided_slice %91 {offsets = [5, 0], sizes = [15, 128], strides = [1, 1]} : vector<26x128xf32> to vector<15x128xf32>
    %98 = vector.extract_strided_slice %91 {offsets = [6, 0], sizes = [15, 128], strides = [1, 1]} : vector<26x128xf32> to vector<15x128xf32>
    %99 = vector.extract_strided_slice %91 {offsets = [7, 0], sizes = [15, 128], strides = [1, 1]} : vector<26x128xf32> to vector<15x128xf32>
    %100 = vector.extract_strided_slice %91 {offsets = [8, 0], sizes = [15, 128], strides = [1, 1]} : vector<26x128xf32> to vector<15x128xf32>
    %101 = vector.extract_strided_slice %91 {offsets = [9, 0], sizes = [15, 128], strides = [1, 1]} : vector<26x128xf32> to vector<15x128xf32>
    %102 = vector.extract_strided_slice %91 {offsets = [10, 0], sizes = [15, 128], strides = [1, 1]} : vector<26x128xf32> to vector<15x128xf32>
    %103 = vector.extract_strided_slice %91 {offsets = [11, 0], sizes = [15, 128], strides = [1, 1]} : vector<26x128xf32> to vector<15x128xf32>
    %104 = tpu.concatenate %92, %93, %94, %95, %96, %97, %98, %99, %100, %101, %102, %103 in 1 : vector<15x128xf32>, vector<15x128xf32>, vector<15x128xf32>, vector<15x128xf32>, vector<15x128xf32>, vector<15x128xf32>, vector<15x128xf32>, vector<15x128xf32>, vector<15x128xf32>, vector<15x128xf32>, vector<15x128xf32>, vector<15x128xf32> -> vector<15x1536xf32>
    %c0_31 = arith.constant 0 : index
    %c0_32 = arith.constant 0 : index
    %105 = vector.load %arg4[%c0_31, %c0_32] : memref<1536x128xf32, #tpu.memory_space<vmem>>, vector<1536x128xf32>
    %cst_33 = arith.constant dense<0.000000e+00> : vector<15x128xf32>
    %106 = tpu.matmul %104, %105, %cst_33 {dimension_numbers = #tpu.dot_dimension_numbers<[1], [0], [0], [1], [0, 0, 1, 1], [], []>} : vector<15x1536xf32>, vector<1536x128xf32>, vector<15x128xf32> -> vector<15x128xf32>
    %c0_34 = arith.constant 0 : index
    %c0_35 = arith.constant 0 : index
    %107 = vector.load %arg5[%c0_34, %c0_35] : memref<1x128xf32, #tpu.memory_space<vmem>>, vector<1x128xf32>
    %108 = vector.broadcast %107 : vector<1x128xf32> to vector<15x128xf32>
    %109 = arith.addf %106, %108 : vector<15x128xf32>
    %110 = vector.extract_strided_slice %109 {offsets = [0, 0], sizes = [2, 128], strides = [1, 1]} : vector<15x128xf32> to vector<2x128xf32>
    %111 = vector.extract_strided_slice %109 {offsets = [13, 0], sizes = [2, 128], strides = [1, 1]} : vector<15x128xf32> to vector<2x128xf32>
    %112 = tpu.concatenate %110, %111 in 0 : vector<2x128xf32>, vector<2x128xf32> -> vector<4x128xf32>
    %c0_36 = arith.constant 0 : index
    %c0_37 = arith.constant 0 : index
    %113 = vector.load %arg6[%c0_36, %c0_37] : memref<4x128xf32, #tpu.memory_space<vmem>>, vector<4x128xf32>
    tpu.vector_store %arg6[%c0_36, %c0_37], %112 {strides = array<i32>} : memref<4x128xf32, #tpu.memory_space<vmem>>, vector<4x128xf32>,
    return
  }
}

</mosaic_0001>

<bundles_post_ra>
// kernel: patch_embedding_forward.1
= control target key start
LH: loop header
LB: loop body
LE: loop exit
PB: predicated region body
PF: predicated region fallthrough
CT: control target
= control target key end

     0   :  { %11 = vsyncpa [#allocation3], 0  ;;  %s2195_s0 = inlined_call_operand.vmem [shape: f32[26,110], index: 0, kind: input, shape index: {}]   ;;  %s2196_s1 = inlined_call_operand.vmem [shape: f32[110,128], index: 1, kind: input, shape index: {}]   ;;  %s2197_s2 = inlined_call_operand.vmem [shape: f32[1,128], index: 2, kind: input, shape index: {}]   ;;  %s2198_s3 = inlined_call_operand.vmem [shape: f32[2,2], index: 3, kind: input, shape index: {}]   ;;  %s2199_s4 = inlined_call_operand.vmem [shape: f32[1536,128], index: 4, kind: input, shape index: {}]   ;;  %s2200_s5 = inlined_call_operand.vmem [shape: f32[1,128], index: 5, kind: input, shape index: {}]   ;;  %s2201_s6 = inlined_call_operand.vmem [shape: f32[4,128], index: 6, kind: output, shape index: {}]  }
   0x1   :  { %s24_s23 = sshll.u32 %s2198_s3, 4  ;;  %s25_s23 = int_to_ptr.vmem [resolvable:$true] %s24_s23 }
   0x2   :  { %s1369_s24 = scalar_lea.vmem %s25_s23, 32  ;;  %p1374_p1 = scmp.lt.s32.totalorder %s25_s23, %s25_s23 }
   0x3   :  { %p1370_p0 = scmp.ne.s32.totalorder %s25_s23, %s1369_s24  ;;  %p1375_p2 = scmp.lt.s32.totalorder %s1369_s24, %s1369_s24 }
   0x5   :  { %p1376_p3 = por %p1375_p2, %p1374_p1 }
   0x7   :  { %p1377_p4 = pnand %p1376_p3, %p1370_p0 }
   0x9   :  { %1380 = shalt.err (!%p1377_p4)
}
   0xa   :  { %s1383_s25 = smov [#allocation2]  }
   0xb   :  { %27 = dma.vmem_to_smem %s25_s23, 32, %s1383_s25, [#allocation3]  }
   0xc   :  { %1381 = dma.done.wait [#allocation3], 32  }
   0xd   :  { %1382 = vsyncadd [#allocation3], 4294967264 }
   0xe   :  { %35 = sfence }
   0xf   :  { %v53_v0 = vld [vmem:[%s2196_s1 + $0x68] sm:$0x3f]  ;;  %vm74_vm0 = vcmask 1045504   ;;  %v52_v1 = vld [vmem:[%s2196_s1 + $0x60] sm:$0xff]  ;;  %v51_v2 = vld [vmem:[%s2196_s1 + $0x58] sm:$0xff]  ;;  %vm61_vm1 = vcmask 900096  }
  0x10   :  { %1329 = vmatprep.subr.msk.mxu0 %vm74_vm0, %v53_v0  ;;  %v50_v3 = vld [vmem:[%s2196_s1 + $0x50] sm:$0xff]  ;;  %v36_v4 = vld [vmem:[%s2195_s0] sm:$0xff]  ;;  %v49_v5 = vld [vmem:[%s2196_s1 + $0x48] sm:$0xff]  ;;  %s1384_s13 = smov 68   ;;  %vm165_vm2 = vcmask 490496   ;;  %vm175_vm3 = vcmask 484352  }
  0x11   :  { %1330 = vmatpush3.msk.msra.mxu0 %vm74_vm0, %v53_v0  ;;  %1357 = vmatprep.mubr.msk.f32.mxu0 %vm61_vm1, %v36_v4  ;;  %v48_v6 = vld [vmem:[%s2196_s1 + $0x40] sm:$0xff]  ;;  %v47_v7 = vld [vmem:[%s2196_s1 + $0x38] sm:$0xff]  ;;  %v46_v8 = vld [vmem:[%s2196_s1 + $0x30] sm:$0xff]  ;;  %vm181_vm4 = vcmask 1041408   ;;  %s220_s7 = sld [smem:[#allocation2]]  ;;  %vm350_vm12 = vcmask 1046528  }
  0x12   :  { %1331 = vmatprep.subr.mxu0 %v52_v1  ;;  %v45_v9 = vld [vmem:[%s2196_s1 + $0x28] sm:$0xff]  ;;  %v44_v10 = vld [vmem:[%s2196_s1 + $0x20] sm:$0xff]  ;;  %v43_v11 = vld [vmem:[%s2196_s1 + $0x18] sm:$0xff]  ;;  %s1079_s8 = sld [smem:[#allocation2 + $0x80]]  ;;  %vm364_vm13 = vcmask 1044480   ;;  %vm380_vm15 = vcmask 1042432  }
  0x13   :  { %1332 = vmatpush3.msra.mxu0 %v52_v1  ;;  %v42_v12 = vld [vmem:[%s2196_s1 + $0x10] sm:$0xff]  ;;  %v41_v13 = vld [vmem:[%s2196_s1 + $0x8] sm:$0xff]  ;;  %v40_v14 = vld [vmem:[%s2196_s1] sm:$0xff]  ;;  %s1080_s9 = sld [smem:[#allocation2 + $0x1]] }
  0x14   :  { %1333 = vmatprep.subr.mxu0 %v51_v2  ;;  %v37_v15 = vld [vmem:[%s2195_s0 + $0x8] sm:$0xff]  ;;  %v38_v16 = vld [vmem:[%s2195_s0 + $0x10] sm:$0xff]  ;;  %v39_v17 = vld [vmem:[%s2195_s0 + $0x18] sm:$0x3]  ;;  %s1081_s10 = sld [smem:[#allocation2 + $0x81]] }
  0x15   :  { %1334 = vmatpush3.msra.mxu0 %v51_v2  ;;  %v1073_v18 = vld [vmem:[%s2197_s2] ss:$0 sm:$0xff]  ;;  %v445_v55 = vld [vmem:[%s2199_s4 + $0xf8] sm:$0xff]  ;;  %v444_v59 = vld [vmem:[%s2199_s4 + $0xf0] sm:$0xff] }
  0x16   :  { %1335 = vmatprep.subr.mxu0 %v50_v3  ;;  %v477_v56 = vld [vmem:[%s2199_s4 + $0x1f8] sm:$0xff]  ;;  %1101 = vmatprep.subr.mxu1 %v445_v55  ;;  %v476_v60 = vld [vmem:[%s2199_s4 + $0x1f0] sm:$0xff]  ;;  %v443_v63 = vld [vmem:[%s2199_s4 + $0xe8] sm:$0xff] }
  0x17   :  { %1336 = vmatpush3.msra.mxu0 %v50_v3  ;;  %v429_v57 = vld [vmem:[%s2199_s4 + $0x78] sm:$0xff]  ;;  %v428_v61 = vld [vmem:[%s2199_s4 + $0x70] sm:$0xff]  ;;  %v475_v0 = vld [vmem:[%s2199_s4 + $0x1e8] sm:$0xff] }
  0x18   :  { %1337 = vmatprep.subr.mxu0 %v49_v5  ;;  %v461_v58 = vld [vmem:[%s2199_s4 + $0x178] sm:$0xff]  ;;  %1102 = vmatpush3.msra.mxu1 %v429_v57  ;;  %v460_v62 = vld [vmem:[%s2199_s4 + $0x170] sm:$0xff]  ;;  %v427_v1 = vld [vmem:[%s2199_s4 + $0x68] sm:$0xff] }
  0x19   :  { %1338 = vmatpush3.msra.mxu0 %v49_v5  ;;  %1103 = vmatprep.subr.mxu1 %v444_v59  ;;  %v459_v2 = vld [vmem:[%s2199_s4 + $0x168] sm:$0xff]  ;;  %v442_v3 = vld [vmem:[%s2199_s4 + $0xe0] sm:$0xff]  ;;  %v509_v59 = vld [vmem:[%s2199_s4 + $0x2f8] sm:$0xff] }
  0x1a   :  { %1339 = vmatprep.subr.mxu0 %v48_v6  ;;  %1104 = vmatpush3.msra.mxu1 %v428_v61  ;;  %v474_v4 = vld [vmem:[%s2199_s4 + $0x1e0] sm:$0xff] }
  0x1b   :  { %1340 = vmatpush3.msra.mxu0 %v48_v6  ;;  %1105 = vmatprep.subr.mxu1 %v443_v63  ;;  %v426_v5 = vld [vmem:[%s2199_s4 + $0x60] sm:$0xff] }
  0x1c   :  { %1341 = vmatprep.subr.mxu0 %v47_v7  ;;  %1106 = vmatpush3.msra.mxu1 %v427_v1  ;;  %v458_v6 = vld [vmem:[%s2199_s4 + $0x160] sm:$0xff] }
  0x1d   :  { %1342 = vmatpush3.msra.mxu0 %v47_v7  ;;  %1107 = vmatprep.subr.mxu1 %v442_v3  ;;  %v441_v7 = vld [vmem:[%s2199_s4 + $0xd8] sm:$0xff]  ;;  %v430_v55 = vld [vmem:[%s2199_s4 + $0x80] sm:$0xff] }
  0x1e   :  { %1343 = vmatprep.subr.mxu0 %v46_v8  ;;  %1108 = vmatpush3.msra.mxu1 %v426_v5  ;;  %v414_v57 = vld [vmem:[%s2199_s4] sm:$0xff] }
  0x1f   :  { %1344 = vmatpush3.msra.mxu0 %v46_v8  ;;  %v473_v8 = vld [vmem:[%s2199_s4 + $0x1d8] sm:$0xff]  ;;  %1109 = vmatprep.subr.mxu1 %v441_v7 }
  0x20   :  { %1345 = vmatprep.subr.mxu0 %v45_v9 }
  0x21   :  { %1346 = vmatpush3.msra.mxu0 %v45_v9  ;;  %v425_v9 = vld [vmem:[%s2199_s4 + $0x58] sm:$0xff] }
  0x22   :  { %1347 = vmatprep.subr.mxu0 %v44_v10  ;;  %1110 = vmatpush3.msra.mxu1 %v425_v9 }
  0x23   :  { %1348 = vmatpush3.msra.mxu0 %v44_v10  ;;  %v457_v10 = vld [vmem:[%s2199_s4 + $0x158] sm:$0xff] }
  0x24   :  { %1349 = vmatprep.subr.mxu0 %v43_v11 }
  0x25   :  { %1350 = vmatpush3.msra.mxu0 %v43_v11  ;;  %v440_v11 = vld [vmem:[%s2199_s4 + $0xd0] sm:$0xff] }
  0x26   :  { %1351 = vmatprep.subr.mxu0 %v42_v12  ;;  %1111 = vmatprep.subr.mxu1 %v440_v11 }
  0x27   :  { %1352 = vmatpush3.msra.mxu0 %v42_v12  ;;  %v472_v12 = vld [vmem:[%s2199_s4 + $0x1d0] sm:$0xff] }
  0x28   :  { %1353 = vmatprep.subr.mxu0 %v41_v13 }
  0x29   :  { %1354 = vmatpush3.msra.mxu0 %v41_v13  ;;  %v424_v13 = vld [vmem:[%s2199_s4 + $0x50] sm:$0xff] }
  0x2a   :  { %1355 = vmatprep.subr.mxu0 %v40_v14  ;;  %1112 = vmatpush3.msra.mxu1 %v424_v13 }
  0x2b   :  { %1356 = vmatpush3.msra.mxu0 %v40_v14  ;;  %v456_v14 = vld [vmem:[%s2199_s4 + $0x150] sm:$0xff] }
  0x2c   :  { %1358 = vmatmul.mubr.msk.f32.vlgmr.msra.gmra.mxu0 %vm61_vm1, %v37_v15  ;;  %1139 = vmatprep.subr.mxu0 %v477_v56  ;;  %v439_v15 = vld [vmem:[%s2199_s4 + $0xc8] sm:$0xff]  ;;  %v462_v56 = vld [vmem:[%s2199_s4 + $0x180] sm:$0xff] }
  0x2d   :  { %1360 = vmatprep.mubr.msk.f32.mxu0 %vm61_vm1, %v38_v16  ;;  %1140 = vmatpush3.msra.mxu0 %v461_v58  ;;  %v471_v16 = vld [vmem:[%s2199_s4 + $0x1c8] sm:$0xff]  ;;  %v446_v58 = vld [vmem:[%s2199_s4 + $0x100] sm:$0xff] }
  0x2e   :  { %1141 = vmatprep.subr.mxu0 %v476_v60  ;;  %1113 = vmatprep.subr.mxu1 %v439_v15  ;;  %v541_v60 = vld [vmem:[%s2199_s4 + $0x3f8] sm:$0xff] }
  0x2f   :  { %1142 = vmatpush3.msra.mxu0 %v460_v62 }
  0x30   :  { %1361 = vmatmul.mubr.msk.f32.gmra.mxu0 %vm61_vm1, %v39_v17  ;;  %1143 = vmatprep.subr.mxu0 %v475_v0  ;;  %v423_v17 = vld [vmem:[%s2199_s4 + $0x48] sm:$0xff]  ;;  %vm395_vm1 = vcmask 1040384  }
  0x31   :  { %1144 = vmatpush3.msra.mxu0 %v459_v2  ;;  %1114 = vmatpush3.msra.mxu1 %v423_v17 }
  0x32   :  { %1145 = vmatprep.subr.mxu0 %v474_v4 }
  0x33   :  { %1146 = vmatpush3.msra.mxu0 %v458_v6 }
  0x34   :  { %1147 = vmatprep.subr.mxu0 %v473_v8 }
  0x35   :  { %1148 = vmatpush3.msra.mxu0 %v457_v10 }
  0x36   :  { %1149 = vmatprep.subr.mxu0 %v472_v12 }
  0x37   :  { %1150 = vmatpush3.msra.mxu0 %v456_v14 }
  0x38   :  { %1151 = vmatprep.subr.mxu0 %v471_v16 }
  0xec   :  { %v1359_v19 = vpop.f32.mrf.mxu0 }
  0xed   :  { %v1486_v20 = vadd.f32 %v1359_v19, %v1073_v18  ;;  %v438_v19 = vld [vmem:[%s2199_s4 + $0xc0] sm:$0xff] }
  0xee   :  { %v144_v21 = vpop.f32.mrf.mxu0  ;;  %1115 = vmatprep.subr.mxu1 %v438_v19 }
  0xef   :  { %v1488_v22 = vadd.f32 %v1073_v18, %v144_v21  ;;  %240 = vrot.lane.b32.xlu0 %v1486_v20, %s1384_s13  ;;  %v191_v28 = vmul.f32 %v1486_v20, %v1486_v20  ;;  %v169_v34 = vsel %vm165_vm2, %v1486_v20, 0.0  ;;  %v470_v21 = vld [vmem:[%s2199_s4 + $0x1c0] sm:$0xff] }
  0xf0   :  { %v1362_v23 = vpop.f32.mrf.mxu0 }
  0xf1   :  { %v190_v24 = vmul.f32 %v1488_v22, %v1488_v22  ;;  %v1494_v26 = vadd.f32 %v1362_v23, %v1073_v18  ;;  %v166_v31 = vsel %vm165_vm2, %v1488_v22, 0.0  ;;  %v197_v38 = vsel %vm165_vm2, %v191_v28, 0.0  ;;  %v422_v23 = vld [vmem:[%s2199_s4 + $0x40] sm:$0xff] }
  0xf2   :  { %v154_v25 = vpop.f32.mrf.mxu0  ;;  %1116 = vmatpush3.msra.mxu1 %v422_v23 }
  0xf3   :  { %238 = vrot.lane.b32.xlu0 %v1488_v22, %s1384_s13  ;;  %276 = vrot.lane.b32.xlu1 %v190_v24, %s1384_s13  ;;  %v1496_v27 = vadd.f32 %v1073_v18, %v154_v25  ;;  %v193_v30 = vmul.f32 %v1494_v26, %v1494_v26  ;;  %v194_v32 = vsel %vm165_vm2, %v190_v24, 0.0  ;;  %v176_v33 = vsel %vm175_vm3, %v1494_v26, 0.0  ;;  %v455_v18 = vld [vmem:[%s2199_s4 + $0x148] sm:$0xff]  ;;  %v454_v24 = vld [vmem:[%s2199_s4 + $0x140] sm:$0xff] }
  0xf4   :  { %1152 = vmatpush3.msra.mxu0 %v455_v18  ;;  %v437_v25 = vld [vmem:[%s2199_s4 + $0xb8] sm:$0xff] }
  0xf5   :  { %v192_v29 = vmul.f32 %v1496_v27, %v1496_v27  ;;  %v203_v35 = vsel %vm175_vm3, %v193_v30, 0.0  ;;  %v172_v36 = vsel %vm165_vm2, %v1496_v27, 0.0  ;;  %1153 = vmatprep.subr.mxu0 %v470_v21  ;;  %1117 = vmatprep.subr.mxu1 %v437_v25 }
  0xf6   :  { %1154 = vmatpush3.msra.mxu0 %v454_v24 }
  0xf7   :  { %278 = vrot.lane.b32.xlu0 %v191_v28, %s1384_s13  ;;  %244 = vrot.lane.b32.xlu1 %v1494_v26, %s1384_s13  ;;  %v200_v37 = vsel %vm165_vm2, %v192_v29, 0.0  ;;  %v469_v28 = vld [vmem:[%s2199_s4 + $0x1b8] sm:$0xff] }
  0xf8   :  { %1155 = vmatprep.subr.mxu0 %v469_v28 }
  0xfb   :  { %280 = vrot.lane.b32.xlu0 %v192_v29, %s1384_s13  ;;  %242 = vrot.lane.b32.xlu1 %v1496_v27, %s1384_s13  ;;  %v421_v29 = vld [vmem:[%s2199_s4 + $0x38] sm:$0xff] }
  0xfc   :  { %1118 = vmatpush3.msra.mxu1 %v421_v29 }
  0xff   :  { %282 = vrot.lane.b32.xlu1 %v193_v30, %s1384_s13  ;;  %v453_v30 = vld [vmem:[%s2199_s4 + $0x138] sm:$0xff] }
 0x100   :  { %1156 = vmatpush3.msra.mxu0 %v453_v30 }
 0x11a   :  { %167 = vadd.xlane.f32.xlu0 %v166_v31  ;;  %v436_v31 = vld [vmem:[%s2199_s4 + $0xb0] sm:$0xff] }
 0x11b   :  { %1119 = vmatprep.subr.mxu1 %v436_v31 }
 0x11e   :  { %195 = vadd.xlane.f32.xlu0 %v194_v32  ;;  %v468_v32 = vld [vmem:[%s2199_s4 + $0x1b0] sm:$0xff] }
 0x11f   :  { %1157 = vmatprep.subr.mxu0 %v468_v32 }
 0x122   :  { %177 = vadd.xlane.f32.xlu0 %v176_v33  ;;  %v420_v33 = vld [vmem:[%s2199_s4 + $0x30] sm:$0xff] }
 0x123   :  { %170 = vadd.xlane.f32.xlu1 %v169_v34  ;;  %v452_v34 = vld [vmem:[%s2199_s4 + $0x130] sm:$0xff]  ;;  %1120 = vmatpush3.msra.mxu1 %v420_v33 }
 0x124   :  { %1158 = vmatpush3.msra.mxu0 %v452_v34 }
 0x126   :  { %204 = vadd.xlane.f32.xlu0 %v203_v35  ;;  %v435_v35 = vld [vmem:[%s2199_s4 + $0xa8] sm:$0xff] }
 0x127   :  { %173 = vadd.xlane.f32.xlu1 %v172_v36  ;;  %v467_v36 = vld [vmem:[%s2199_s4 + $0x1a8] sm:$0xff]  ;;  %1121 = vmatprep.subr.mxu1 %v435_v35 }
 0x128   :  { %1159 = vmatprep.subr.mxu0 %v467_v36 }
 0x12a   :  { %201 = vadd.xlane.f32.xlu0 %v200_v37  ;;  %v419_v37 = vld [vmem:[%s2199_s4 + $0x28] sm:$0xff] }
 0x12b   :  { %198 = vadd.xlane.f32.xlu1 %v197_v38  ;;  %v451_v38 = vld [vmem:[%s2199_s4 + $0x128] sm:$0xff]  ;;  %1122 = vmatpush3.msra.mxu1 %v419_v37 }
 0x12c   :  { %1160 = vmatpush3.msra.mxu0 %v451_v38 }
 0x161   :  { %v241_v39 = vpop.permute.xlu0 %240 }
 0x162   :  { %v253_v40 = vsel %vm165_vm2, %v241_v39, 0.0  ;;  %v434_v39 = vld [vmem:[%s2199_s4 + $0xa0] sm:$0xff] }
 0x163   :  { %254 = vadd.xlane.f32.xlu0 %v253_v40  ;;  %v466_v40 = vld [vmem:[%s2199_s4 + $0x1a0] sm:$0xff]  ;;  %1123 = vmatprep.subr.mxu1 %v434_v39 }
 0x164   :  { %1161 = vmatprep.subr.mxu0 %v466_v40 }
 0x165   :  { %v239_v41 = vpop.permute.xlu0 %238  ;;  %v277_v42 = vpop.permute.xlu1 %276 }
 0x166   :  { %v250_v43 = vsel %vm165_vm2, %v239_v41, 0.0  ;;  %v288_v47 = vsel %vm165_vm2, %v277_v42, 0.0  ;;  %v418_v41 = vld [vmem:[%s2199_s4 + $0x20] sm:$0xff] }
 0x167   :  { %251 = vadd.xlane.f32.xlu0 %v250_v43  ;;  %v450_v42 = vld [vmem:[%s2199_s4 + $0x120] sm:$0xff]  ;;  %v433_v43 = vld [vmem:[%s2199_s4 + $0x98] sm:$0xff]  ;;  %1124 = vmatpush3.msra.mxu1 %v418_v41 }
 0x168   :  { %1162 = vmatpush3.msra.mxu0 %v450_v42  ;;  %1125 = vmatprep.subr.mxu1 %v433_v43 }
 0x169   :  { %v279_v44 = vpop.permute.xlu0 %278  ;;  %v245_v45 = vpop.permute.xlu1 %244 }
 0x16a   :  { %v291_v46 = vsel %vm165_vm2, %v279_v44, 0.0  ;;  %v259_v48 = vsel %vm175_vm3, %v245_v45, 0.0  ;;  %v465_v44 = vld [vmem:[%s2199_s4 + $0x198] sm:$0xff] }
 0x16b   :  { %292 = vadd.xlane.f32.xlu1 %v291_v46  ;;  %289 = vadd.xlane.f32.xlu0 %v288_v47  ;;  %v417_v45 = vld [vmem:[%s2199_s4 + $0x18] sm:$0xff]  ;;  %v432_v47 = vld [vmem:[%s2199_s4 + $0x90] sm:$0xff] }
 0x16c   :  { %v449_v46 = vld [vmem:[%s2199_s4 + $0x118] sm:$0xff]  ;;  %1163 = vmatprep.subr.mxu0 %v465_v44  ;;  %1126 = vmatpush3.msra.mxu1 %v417_v45 }
 0x16d   :  { %v243_v49 = vpop.permute.xlu1 %242  ;;  %v281_v53 = vpop.permute.xlu0 %280  ;;  %1164 = vmatpush3.msra.mxu0 %v449_v46  ;;  %1127 = vmatprep.subr.mxu1 %v432_v47 }
 0x16e   :  { %v256_v51 = vsel %vm165_vm2, %v243_v49, 0.0  ;;  %v294_v54 = vsel %vm165_vm2, %v281_v53, 0.0  ;;  %v416_v49 = vld [vmem:[%s2199_s4 + $0x10] sm:$0xff]  ;;  %v415_v53 = vld [vmem:[%s2199_s4 + $0x8] sm:$0xff] }
 0x16f   :  { %260 = vadd.xlane.f32.xlu1 %v259_v48  ;;  %v464_v48 = vld [vmem:[%s2199_s4 + $0x190] sm:$0xff]  ;;  %1128 = vmatpush3.msra.mxu1 %v416_v49 }
 0x170   :  { %1165 = vmatprep.subr.mxu0 %v464_v48 }
 0x171   :  { %v283_v50 = vpop.permute.xlu1 %282 }
 0x172   :  { %v297_v52 = vsel %vm175_vm3, %v283_v50, 0.0  ;;  %v448_v50 = vld [vmem:[%s2199_s4 + $0x110] sm:$0xff] }
 0x173   :  { %257 = vadd.xlane.f32.xlu1 %v256_v51  ;;  %298 = vadd.xlane.f32.xlu0 %v297_v52  ;;  %v431_v51 = vld [vmem:[%s2199_s4 + $0x88] sm:$0xff] }
 0x174   :  { %v463_v52 = vld [vmem:[%s2199_s4 + $0x188] sm:$0xff]  ;;  %1166 = vmatpush3.msra.mxu0 %v448_v50  ;;  %1129 = vmatprep.subr.mxu1 %v431_v51 }
 0x175   :  { %1167 = vmatprep.subr.mxu0 %v463_v52  ;;  %1130 = vmatpush3.msra.mxu1 %v415_v53 }
 0x176   :  { %1131 = vmatprep.subr.mxu1 %v430_v55 }
 0x177   :  { %295 = vadd.xlane.f32.xlu1 %v294_v54  ;;  %v447_v54 = vld [vmem:[%s2199_s4 + $0x108] sm:$0xff]  ;;  %1132 = vmatpush3.msra.mxu1 %v414_v57 }
 0x178   :  { %1168 = vmatpush3.msra.mxu0 %v447_v54  ;;  %1177 = vmatprep.subr.mxu1 %v509_v59 }
 0x179   :  { %1169 = vmatprep.subr.mxu0 %v462_v56 }
 0x17a   :  { %1170 = vmatpush3.msra.mxu0 %v446_v58 }
 0x17b   :  { %1215 = vmatprep.subr.mxu0 %v541_v60 }
 0x1a3   :  { %v168_v61 = vpop.xlane.xlu0 %167 }
 0x1a7   :  { %v196_v62 = vpop.xlane.xlu0 %195 }
 0x1ab   :  { %v178_v0 = vpop.xlane.xlu0 %177 }
 0x1ac   :  { %v171_v63 = vpop.xlane.xlu1 %170  ;;  %v182_v9 = vsel %vm181_vm4, %v178_v0, 0.0 }
 0x1ad   :  { %v179_v4 = vadd.f32 %v171_v63, %v168_v61 }
 0x1af   :  { %v205_v2 = vpop.xlane.xlu0 %204 }
 0x1b0   :  { %v174_v1 = vpop.xlane.xlu1 %173  ;;  %v208_v11 = vsel %vm181_vm4, %v205_v2, 0.0 }
 0x1b1   :  { %v180_v6 = vadd.f32 %v179_v4, %v174_v1  ;;  %v223_v4 = vstv %s220_s7 }
 0x1b3   :  { %v202_v7 = vpop.xlane.xlu0 %201  ;;  %v183_v10 = vadd.f32 %v182_v9, %v180_v6  ;;  %v227_v9 = vstv %s1079_s8 }
 0x1b4   :  { %v199_v3 = vpop.xlane.xlu1 %198 }
 0x1b5   :  { %v206_v5 = vadd.f32 %v199_v3, %v196_v62  ;;  %v184_v13 = vrot.slane %v183_v10, 4 }
 0x1b7   :  { %v207_v8 = vadd.f32 %v206_v5, %v202_v7  ;;  %v185_v15 = vadd.f32 %v184_v13, %v183_v10  ;;  %v163_v5 = vlaneseq  ;;  %v317_v10 = vstv %s1080_s9 }
 0x1b9   :  { %v209_v12 = vadd.f32 %v208_v11, %v207_v8  ;;  %v186_v17 = vrot.slane %v185_v15, 2  ;;  %v164_v7 = vand.u32 127, %v163_v5 }
 0x1bb   :  { %v210_v14 = vrot.slane %v209_v12, 4  ;;  %v187_v21 = vadd.f32 %v186_v17, %v185_v15  ;;  %vm323_vm5 = vcmp.ge.s32.totalorder %v164_v7, 60  ;;  %vm324_vm6 = vcmp.lt.s32.totalorder %v164_v7, 120 }
 0x1bc   :  { %vm230_vm7 = vcmp.lt.s32.totalorder %v164_v7, 60  ;;  %vm325_vm8 = vmand %vm323_vm5, %vm324_vm6  ;;  %v321_v15 = vstv %s1081_s10  ;;  %v522_v7 = vld [vmem:[%s2199_s4 + $0x360] sm:$0xff] }
 0x1bd   :  { %v211_v16 = vadd.f32 %v210_v14, %v209_v12  ;;  %v188_v28 = vrot.slane %v187_v21, 1 }
 0x1bf   :  { %v212_v19 = vrot.slane %v211_v16, 2  ;;  %v189_v31 = vadd.f32 %v188_v28, %v187_v21 }
 0x1c1   :  { %v213_v24 = vadd.f32 %v212_v19, %v211_v16  ;;  %v216_v38 = vmul.f32 0.00064102566, %v189_v31 }
 0x1c3   :  { %v214_v30 = vrot.slane %v213_v24, 1  ;;  %v218_v47 = vmul.f32 %v216_v38, %v216_v38 }
 0x1c5   :  { %v215_v35 = vadd.f32 %v214_v30, %v213_v24 }
 0x1c7   :  { %v217_v43 = vmul.f32 0.00064102566, %v215_v35 }
 0x1c9   :  { %v219_v50 = vsub.f32 %v217_v43, %v218_v47  ;;  %v493_v43 = vld [vmem:[%s2199_s4 + $0x278] sm:$0xff] }
 0x1cb   :  { %v221_v55 = vadd.f32 1e-05, %v219_v50 }
 0x1cd   :  { %1365 = vrsqrt.f32 %v221_v55  ;;  %v539_v55 = vld [vmem:[%s2199_s4 + $0x3e8] sm:$0xff] }
 0x1da   :  { %v1366_v3 = vpop.eup %1365 }
 0x1db   :  { %v224_v6 = vmul.f32 %v1366_v3, %v223_v4  ;;  %v538_v3 = vld [vmem:[%s2199_s4 + $0x3e0] sm:$0xff] }
 0x1dd   :  { %v226_v8 = vmul.f32 %v224_v6, %v216_v38  ;;  %v232_v14 = vsel %vm230_vm7, %v224_v6, 0.0  ;;  %v490_v6 = vld [vmem:[%s2199_s4 + $0x260] sm:$0xff] }
 0x1df   :  { %v228_v12 = vsub.f32 %v227_v9, %v226_v8 }
 0x1e1   :  { %v233_v19 = vsel %vm230_vm7, %v228_v12, 0.0  ;;  %v489_v12 = vld [vmem:[%s2199_s4 + $0x258] sm:$0xff] }
 0x1ec   :  { %v255_v18 = vpop.xlane.xlu0 %254 }
 0x1f0   :  { %v252_v25 = vpop.xlane.xlu0 %251 }
 0x1f1   :  { %v262_v32 = vadd.f32 %v255_v18, %v252_v25 }
 0x1f4   :  { %v293_v23 = vpop.xlane.xlu1 %292  ;;  %v290_v33 = vpop.xlane.xlu0 %289 }
 0x1f5   :  { %v300_v39 = vadd.f32 %v293_v23, %v290_v33 }
 0x1f8   :  { %v261_v29 = vpop.xlane.xlu1 %260 }
 0x1f9   :  { %v264_v37 = vsel %vm181_vm4, %v261_v29, 0.0 }
 0x1fc   :  { %v258_v34 = vpop.xlane.xlu1 %257  ;;  %v299_v41 = vpop.xlane.xlu0 %298 }
 0x1fd   :  { %v263_v36 = vadd.f32 %v262_v32, %v258_v34  ;;  %v302_v46 = vsel %vm181_vm4, %v299_v41, 0.0 }
 0x1ff   :  { %v265_v40 = vadd.f32 %v264_v37, %v263_v36 }
 0x200   :  { %v296_v42 = vpop.xlane.xlu1 %295 }
 0x201   :  { %v266_v44 = vrot.slane %v265_v40, 4  ;;  %v301_v45 = vadd.f32 %v300_v39, %v296_v42 }
 0x203   :  { %v267_v48 = vadd.f32 %v266_v44, %v265_v40  ;;  %v303_v49 = vadd.f32 %v302_v46, %v301_v45  ;;  %v525_v44 = vld [vmem:[%s2199_s4 + $0x378] sm:$0xff] }
 0x205   :  { %v268_v51 = vrot.slane %v267_v48, 2  ;;  %v304_v52 = vrot.slane %v303_v49, 4 }
 0x207   :  { %v269_v53 = vadd.f32 %v268_v51, %v267_v48  ;;  %v305_v54 = vadd.f32 %v304_v52, %v303_v49  ;;  %v508_v48 = vld [vmem:[%s2199_s4 + $0x2f0] sm:$0xff] }
 0x208   :  { %v540_v49 = vld [vmem:[%s2199_s4 + $0x3f0] sm:$0xff] }
 0x209   :  { %v270_v56 = vrot.slane %v269_v53, 1  ;;  %v306_v57 = vrot.slane %v305_v54, 2  ;;  %v492_v51 = vld [vmem:[%s2199_s4 + $0x270] sm:$0xff] }
 0x20a   :  { %v524_v52 = vld [vmem:[%s2199_s4 + $0x370] sm:$0xff] }
 0x20b   :  { %v271_v58 = vadd.f32 %v270_v56, %v269_v53  ;;  %v307_v59 = vadd.f32 %v306_v57, %v305_v54  ;;  %v507_v54 = vld [vmem:[%s2199_s4 + $0x2e8] sm:$0xff] }
 0x20d   :  { %v310_v60 = vmul.f32 0.00064102566, %v271_v58  ;;  %v308_v61 = vrot.slane %v307_v59, 1 }
 0x20f   :  { %v309_v62 = vadd.f32 %v308_v61, %v307_v59  ;;  %v312_v63 = vmul.f32 %v310_v60, %v310_v60  ;;  %v491_v59 = vld [vmem:[%s2199_s4 + $0x268] sm:$0xff] }
 0x211   :  { %v311_v0 = vmul.f32 0.00064102566, %v309_v62 }
 0x213   :  { %v313_v1 = vsub.f32 %v311_v0, %v312_v63 }
 0x215   :  { %v315_v2 = vadd.f32 1e-05, %v313_v1  ;;  %v506_v1 = vld [vmem:[%s2199_s4 + $0x2e0] sm:$0xff] }
 0x217   :  { %1367 = vrsqrt.f32 %v315_v2 }
 0x224   :  { %v1368_v11 = vpop.eup %1367 }
 0x225   :  { %v318_v13 = vmul.f32 %v1368_v11, %v317_v10  ;;  %v505_v10 = vld [vmem:[%s2199_s4 + $0x2d8] sm:$0xff] }
 0x226   :  { %v537_v11 = vld [vmem:[%s2199_s4 + $0x3d8] sm:$0xff] }
 0x227   :  { %v320_v16 = vmul.f32 %v318_v13, %v310_v60  ;;  %v326_v17 = vsel %vm325_vm8, %v318_v13, %v232_v14  ;;  %v523_v60 = vld [vmem:[%s2199_s4 + $0x368] sm:$0xff]  ;;  %v521_v13 = vld [vmem:[%s2199_s4 + $0x358] sm:$0xff]  ;;  %v504_v14 = vld [vmem:[%s2199_s4 + $0x2d0] sm:$0xff] }
 0x228   :  { %v328_v21 = vmul.f32 %v326_v17, %v1488_v22  ;;  %v329_v23 = vmul.f32 %v326_v17, %v1486_v20  ;;  %v330_v24 = vmul.f32 %v326_v17, %v1496_v27  ;;  %v331_v25 = vmul.f32 %v326_v17, %v1494_v26  ;;  %v520_v17 = vld [vmem:[%s2199_s4 + $0x350] sm:$0xff] }
 0x229   :  { %v322_v18 = vsub.f32 %v321_v15, %v320_v16  ;;  %v536_v15 = vld [vmem:[%s2199_s4 + $0x3d0] sm:$0xff] }
 0x22a   :  { %v488_v16 = vld [vmem:[%s2199_s4 + $0x250] sm:$0xff] }
 0x22b   :  { %v327_v28 = vsel %vm325_vm8, %v322_v18, %v233_v19  ;;  %v503_v18 = vld [vmem:[%s2199_s4 + $0x2c8] sm:$0xff] }
 0x22c   :  { %v332_v29 = vadd.f32 %v328_v21, %v327_v28  ;;  %v333_v30 = vadd.f32 %v329_v23, %v327_v28  ;;  %v334_v31 = vadd.f32 %v330_v24, %v327_v28  ;;  %v335_v32 = vadd.f32 %v331_v25, %v327_v28  ;;  %v535_v19 = vld [vmem:[%s2199_s4 + $0x3c8] sm:$0xff]  ;;  %v502_v24 = vld [vmem:[%s2199_s4 + $0x2c0] sm:$0xff] }
 0x22d   :  { %v487_v21 = vld [vmem:[%s2199_s4 + $0x248] sm:$0xff]  ;;  %v534_v25 = vld [vmem:[%s2199_s4 + $0x3c0] sm:$0xff] }
 0x22e   :  { %vm336_vm9 = vcmp.gt.f32.partialorder %v332_v29, 0.0  ;;  %vm337_vm10 = vcmp.gt.f32.partialorder %v333_v30, 0.0  ;;  %v340_v33 = vmul.f32 0.2, %v332_v29  ;;  %v341_v34 = vmul.f32 0.2, %v333_v30 }
 0x22f   :  { %vm338_vm11 = vcmp.gt.f32.partialorder %v334_v31, 0.0  ;;  %v342_v35 = vmul.f32 0.2, %v334_v31  ;;  %v343_v47 = vmul.f32 0.2, %v335_v32  ;;  %vm339_vm14 = vcmp.gt.f32.partialorder %v335_v32, 0.0 }
 0x230   :  { %v1732_v36 = vsel %vm336_vm9, %v332_v29, %v340_v33  ;;  %v1734_v22 = vsel %vm337_vm10, %v333_v30, %v341_v34  ;;  %v519_v23 = vld [vmem:[%s2199_s4 + $0x348] sm:$0xff]  ;;  %v486_v28 = vld [vmem:[%s2199_s4 + $0x240] sm:$0xff]  ;;  %v501_v30 = vld [vmem:[%s2199_s4 + $0x2b8] sm:$0xff] }
 0x231   :  { %v351_v20 = vrot.slane %v1732_v36, 1  ;;  %v1738_v26 = vrot.slane %v1734_v22, 1  ;;  %v365_v27 = vrot.slane %v1732_v36, 3  ;;  %v366_v37 = vrot.slane %v1734_v22, 3  ;;  %v518_v29 = vld [vmem:[%s2199_s4 + $0x340] sm:$0xff]  ;;  %v517_v33 = vld [vmem:[%s2199_s4 + $0x338] sm:$0xff] }
 0x232   :  { %v357_v38 = vrot.slane %v1732_v36, 2  ;;  %v358_v39 = vrot.slane %v1734_v22, 2  ;;  %v1744_v40 = vsel %vm338_vm11, %v334_v31, %v342_v35  ;;  %v381_v56 = vrot.slane %v1732_v36, 5  ;;  %v533_v31 = vld [vmem:[%s2199_s4 + $0x3b8] sm:$0xff]  ;;  %v500_v34 = vld [vmem:[%s2199_s4 + $0x2b0] sm:$0xff] }
 0x233   :  { %v353_v41 = vsel %vm350_vm12, %v351_v20, %v1738_v26  ;;  %v367_v42 = vsel %vm364_vm13, %v365_v27, %v366_v37  ;;  %v368_v45 = vrot.slane %v1744_v40, 3  ;;  %v360_v53 = vrot.slane %v1744_v40, 2  ;;  %v532_v35 = vld [vmem:[%s2199_s4 + $0x3b0] sm:$0xff] }
 0x234   :  { %677 = vmatprep.mubr.f32.mxu1 %v353_v41  ;;  %752 = vmatprep.mubr.f32.mxu0 %v367_v42  ;;  %v359_v46 = vsel %vm74_vm0, %v357_v38, %v358_v39  ;;  %v382_v57 = vrot.slane %v1734_v22, 5  ;;  %v347_v58 = vsel %vm339_vm14, %v335_v32, %v343_v47  ;;  %v396_v61 = vrot.slane %v1732_v36, 7  ;;  %v485_v32 = vld [vmem:[%s2199_s4 + $0x238] sm:$0xff]  ;;  %v484_v20 = vld [vmem:[%s2199_s4 + $0x230] sm:$0xff]  ;;  %v531_v38 = vld [vmem:[%s2199_s4 + $0x3a8] sm:$0xff] }
 0x235   :  { %678 = vmatmul.mubr.f32.vlgmr.msra.gmra.mxu1 %v1732_v36  ;;  %753 = vmatmul.mubr.f32.vlgmr.msra.gmra.mxu0 %v359_v46  ;;  %v1765_v50 = vsel %vm364_vm13, %v366_v37, %v368_v45  ;;  %v397_v62 = vrot.slane %v1734_v22, 7  ;;  %v411_v63 = vrot.slane %v347_v58, 3  ;;  %v1793_v0 = vsel %vm74_vm0, %v358_v39, %v360_v53  ;;  %v516_v27 = vld [vmem:[%s2199_s4 + $0x330] sm:$0xff]  ;;  %v499_v37 = vld [vmem:[%s2199_s4 + $0x2a8] sm:$0xff]  ;;  %v498_v42 = vld [vmem:[%s2199_s4 + $0x2a0] sm:$0xff] }
 0x236   :  { %1178 = vmatpush3.msra.mxu1 %v493_v43  ;;  %1216 = vmatpush3.msra.mxu0 %v525_v44  ;;  %v408_v2 = vrot.slane %v347_v58, 2  ;;  %v383_v5 = vsel %vm380_vm15, %v381_v56, %v382_v57  ;;  %v483_v39 = vld [vmem:[%s2199_s4 + $0x228] sm:$0xff]  ;;  %v530_v43 = vld [vmem:[%s2199_s4 + $0x3a0] sm:$0xff]  ;;  %v497_v46 = vld [vmem:[%s2199_s4 + $0x298] sm:$0xff] }
 0x237   :  { %682 = vmatprep.mubr.f32.mxu1 %v1738_v26  ;;  %757 = vmatprep.mubr.f32.mxu0 %v1765_v50  ;;  %v1804_v4 = vsel %vm364_vm13, %v368_v45, %v411_v63  ;;  %v398_v9 = vsel %vm395_vm1, %v396_v61, %v397_v62  ;;  %v515_v41 = vld [vmem:[%s2199_s4 + $0x328] sm:$0xff]  ;;  %v482_v44 = vld [vmem:[%s2199_s4 + $0x220] sm:$0xff]  ;;  %v529_v47 = vld [vmem:[%s2199_s4 + $0x398] sm:$0xff]  ;;  %v373_v63 = vrot.slane %v1732_v36, 4 }
 0x238   :  { %1179 = vmatprep.subr.mxu1 %v508_v48  ;;  %1217 = vmatprep.subr.mxu0 %v540_v49  ;;  %v1816_v8 = vsel %vm74_vm0, %v360_v53, %v408_v2  ;;  %v514_v45 = vld [vmem:[%s2199_s4 + $0x320] sm:$0xff]  ;;  %v481_v48 = vld [vmem:[%s2199_s4 + $0x218] sm:$0xff]  ;;  %v480_v53 = vld [vmem:[%s2199_s4 + $0x210] sm:$0xff]  ;;  %v388_v2 = vrot.slane %v1732_v36, 6  ;;  %vm372_vm0 = vcmask 1043456  }
 0x239   :  { %1180 = vmatpush3.msra.mxu1 %v492_v51  ;;  %1218 = vmatpush3.msra.mxu0 %v524_v52  ;;  %v513_v49 = vld [vmem:[%s2199_s4 + $0x318] sm:$0xff]  ;;  %v496_v51 = vld [vmem:[%s2199_s4 + $0x290] sm:$0xff]  ;;  %v527_v56 = vld [vmem:[%s2199_s4 + $0x388] sm:$0xff] }
 0x23a   :  { %1181 = vmatprep.subr.mxu1 %v507_v54  ;;  %1219 = vmatprep.subr.mxu0 %v539_v55  ;;  %v528_v52 = vld [vmem:[%s2199_s4 + $0x390] sm:$0xff]  ;;  %v495_v55 = vld [vmem:[%s2199_s4 + $0x288] sm:$0xff]  ;;  %v526_v61 = vld [vmem:[%s2199_s4 + $0x380] sm:$0xff] }
 0x23b   :  { %683 = vmatmul.mubr.f32.gmra.mxu1 %v1734_v22  ;;  %758 = vmatmul.mubr.f32.gmra.mxu0 %v1793_v0  ;;  %v512_v54 = vld [vmem:[%s2199_s4 + $0x310] sm:$0xff]  ;;  %v479_v58 = vld [vmem:[%s2199_s4 + $0x208] sm:$0xff]  ;;  %v573_v36 = vld [vmem:[%s2199_s4 + $0x4f8] sm:$0xff] }
 0x23c   :  { %1182 = vmatpush3.msra.mxu1 %v491_v59  ;;  %1220 = vmatpush3.msra.mxu0 %v523_v60  ;;  %v511_v59 = vld [vmem:[%s2199_s4 + $0x308] sm:$0xff]  ;;  %v494_v60 = vld [vmem:[%s2199_s4 + $0x280] sm:$0xff] }
 0x23d   :  { %1183 = vmatprep.subr.mxu1 %v506_v1  ;;  %827 = vmatprep.mubr.f32.mxu1 %v383_v5  ;;  %v374_v1 = vrot.slane %v1734_v22, 4  ;;  %v478_v5 = vld [vmem:[%s2199_s4 + $0x200] sm:$0xff] }
 0x23e   :  { %1221 = vmatprep.subr.mxu0 %v538_v3  ;;  %902 = vmatprep.mubr.f32.mxu0 %v398_v9  ;;  %v389_v3 = vrot.slane %v1734_v22, 6  ;;  %v399_v9 = vrot.slane %v1744_v40, 7 }
 0x23f   :  { %1184 = vmatpush3.msra.mxu1 %v490_v6  ;;  %1222 = vmatpush3.msra.mxu0 %v522_v7  ;;  %v510_v6 = vld [vmem:[%s2199_s4 + $0x300] sm:$0xff]  ;;  %v384_v7 = vrot.slane %v1744_v40, 5 }
 0x240   :  { %1185 = vmatprep.subr.mxu1 %v505_v10  ;;  %1223 = vmatprep.subr.mxu0 %v537_v11  ;;  %v605_v10 = vld [vmem:[%s2199_s4 + $0x5f8] sm:$0xff]  ;;  %v375_v11 = vsel %vm372_vm0, %v373_v63, %v374_v1  ;;  %v595_v63 = vld [vmem:[%s2199_s4 + $0x5a8] sm:$0xff] }
 0x241   :  { %1186 = vmatpush3.msra.mxu1 %v489_v12  ;;  %1224 = vmatpush3.msra.mxu0 %v521_v13  ;;  %v390_v12 = vsel %vm181_vm4, %v388_v2, %v389_v3  ;;  %v557_v13 = vld [vmem:[%s2199_s4 + $0x478] sm:$0xff]  ;;  %v579_v2 = vld [vmem:[%s2199_s4 + $0x528] sm:$0xff] }
 0x242   :  { %1187 = vmatprep.subr.mxu1 %v504_v14  ;;  %1225 = vmatprep.subr.mxu0 %v536_v15  ;;  %v589_v14 = vld [vmem:[%s2199_s4 + $0x578] sm:$0xff]  ;;  %v385_v15 = vsel %vm380_vm15, %v382_v57, %v384_v7  ;;  %v556_v57 = vld [vmem:[%s2199_s4 + $0x470] sm:$0xff]  ;;  %v578_v7 = vld [vmem:[%s2199_s4 + $0x520] sm:$0xff] }
 0x243   :  { %1188 = vmatpush3.msra.mxu1 %v488_v16  ;;  %1226 = vmatpush3.msra.mxu0 %v520_v17  ;;  %v400_v16 = vsel %vm395_vm1, %v397_v62, %v399_v9  ;;  %v572_v17 = vld [vmem:[%s2199_s4 + $0x4f0] sm:$0xff]  ;;  %v561_v9 = vld [vmem:[%s2199_s4 + $0x498] sm:$0xff] }
 0x244   :  { %1189 = vmatprep.subr.mxu1 %v503_v18  ;;  %1227 = vmatprep.subr.mxu0 %v535_v19  ;;  %v604_v18 = vld [vmem:[%s2199_s4 + $0x5f0] sm:$0xff]  ;;  %v376_v19 = vrot.slane %v1744_v40, 4 }
 0x245   :  { %1190 = vmatpush3.msra.mxu1 %v487_v21  ;;  %1228 = vmatpush3.msra.mxu0 %v519_v23  ;;  %v391_v21 = vrot.slane %v1744_v40, 6  ;;  %v588_v62 = vld [vmem:[%s2199_s4 + $0x570] sm:$0xff]  ;;  %v403_v23 = vrot.slane %v1744_v40, 1 }
 0x246   :  { %1191 = vmatprep.subr.mxu1 %v502_v24  ;;  %1229 = vmatprep.subr.mxu0 %v534_v25  ;;  %v571_v24 = vld [vmem:[%s2199_s4 + $0x4e8] sm:$0xff] }
 0x247   :  { %1192 = vmatpush3.msra.mxu1 %v486_v28  ;;  %1230 = vmatpush3.msra.mxu0 %v518_v29  ;;  %v603_v25 = vld [vmem:[%s2199_s4 + $0x5e8] sm:$0xff]  ;;  %v377_v28 = vsel %vm372_vm0, %v374_v1, %v376_v19  ;;  %v392_v29 = vsel %vm181_vm4, %v389_v3, %v391_v21  ;;  %v562_v3 = vld [vmem:[%s2199_s4 + $0x4a0] sm:$0xff] }
 0x248   :  { %1193 = vmatprep.subr.mxu1 %v501_v30  ;;  %1231 = vmatprep.subr.mxu0 %v533_v31  ;;  %v555_v30 = vld [vmem:[%s2199_s4 + $0x468] sm:$0xff]  ;;  %v558_v21 = vld [vmem:[%s2199_s4 + $0x480] sm:$0xff] }
 0x249   :  { %1194 = vmatpush3.msra.mxu1 %v485_v32  ;;  %1232 = vmatpush3.msra.mxu0 %v517_v33  ;;  %v587_v31 = vld [vmem:[%s2199_s4 + $0x568] sm:$0xff]  ;;  %v404_v32 = vsel %vm350_vm12, %v1738_v26, %v403_v23  ;;  %v570_v33 = vld [vmem:[%s2199_s4 + $0x4e0] sm:$0xff]  ;;  %v569_v26 = vld [vmem:[%s2199_s4 + $0x4d8] sm:$0xff] }
 0x24a   :  { %1195 = vmatprep.subr.mxu1 %v500_v34  ;;  %1233 = vmatprep.subr.mxu0 %v532_v35  ;;  %v602_v34 = vld [vmem:[%s2199_s4 + $0x5e0] sm:$0xff]  ;;  %v547_v1 = vld [vmem:[%s2199_s4 + $0x428] sm:$0xff] }
 0x24b   :  { %1196 = vmatpush3.msra.mxu1 %v484_v20  ;;  %1234 = vmatpush3.msra.mxu0 %v516_v27  ;;  %v554_v35 = vld [vmem:[%s2199_s4 + $0x460] sm:$0xff]  ;;  %v601_v27 = vld [vmem:[%s2199_s4 + $0x5d8] sm:$0xff]  ;;  %v575_v19 = vld [vmem:[%s2199_s4 + $0x508] sm:$0xff] }
 0x24c   :  { %1197 = vmatprep.subr.mxu1 %v499_v37  ;;  %1235 = vmatprep.subr.mxu0 %v531_v38  ;;  %v586_v20 = vld [vmem:[%s2199_s4 + $0x560] sm:$0xff]  ;;  %v553_v37 = vld [vmem:[%s2199_s4 + $0x458] sm:$0xff] }
 0x24d   :  { %1198 = vmatpush3.msra.mxu1 %v483_v39  ;;  %1236 = vmatpush3.msra.mxu0 %v515_v41  ;;  %v585_v38 = vld [vmem:[%s2199_s4 + $0x558] sm:$0xff]  ;;  %v600_v39 = vld [vmem:[%s2199_s4 + $0x5d0] sm:$0xff] }
 0x24e   :  { %1199 = vmatprep.subr.mxu1 %v498_v42  ;;  %1237 = vmatprep.subr.mxu0 %v530_v43  ;;  %v552_v41 = vld [vmem:[%s2199_s4 + $0x450] sm:$0xff]  ;;  %v567_v43 = vld [vmem:[%s2199_s4 + $0x4c8] sm:$0xff] }
 0x24f   :  { %1200 = vmatpush3.msra.mxu1 %v482_v44  ;;  %1238 = vmatpush3.msra.mxu0 %v514_v45  ;;  %v584_v42 = vld [vmem:[%s2199_s4 + $0x550] sm:$0xff]  ;;  %v599_v44 = vld [vmem:[%s2199_s4 + $0x5c8] sm:$0xff] }
 0x250   :  { %1201 = vmatprep.subr.mxu1 %v497_v46  ;;  %1239 = vmatprep.subr.mxu0 %v529_v47  ;;  %v551_v45 = vld [vmem:[%s2199_s4 + $0x448] sm:$0xff]  ;;  %v566_v47 = vld [vmem:[%s2199_s4 + $0x4c0] sm:$0xff] }
 0x251   :  { %1202 = vmatpush3.msra.mxu1 %v481_v48  ;;  %1240 = vmatpush3.msra.mxu0 %v513_v49  ;;  %v583_v46 = vld [vmem:[%s2199_s4 + $0x548] sm:$0xff]  ;;  %v598_v48 = vld [vmem:[%s2199_s4 + $0x5c0] sm:$0xff] }
 0x252   :  { %1203 = vmatprep.subr.mxu1 %v496_v51  ;;  %1241 = vmatprep.subr.mxu0 %v528_v52  ;;  %v550_v49 = vld [vmem:[%s2199_s4 + $0x440] sm:$0xff]  ;;  %v565_v52 = vld [vmem:[%s2199_s4 + $0x4b8] sm:$0xff] }
 0x253   :  { %1204 = vmatpush3.msra.mxu1 %v480_v53  ;;  %1242 = vmatpush3.msra.mxu0 %v512_v54  ;;  %v582_v51 = vld [vmem:[%s2199_s4 + $0x540] sm:$0xff]  ;;  %v597_v53 = vld [vmem:[%s2199_s4 + $0x5b8] sm:$0xff] }
 0x254   :  { %1205 = vmatprep.subr.mxu1 %v495_v55  ;;  %1243 = vmatprep.subr.mxu0 %v527_v56  ;;  %v549_v54 = vld [vmem:[%s2199_s4 + $0x438] sm:$0xff]  ;;  %v564_v56 = vld [vmem:[%s2199_s4 + $0x4b0] sm:$0xff] }
 0x255   :  { %1206 = vmatpush3.msra.mxu1 %v479_v58  ;;  %1244 = vmatpush3.msra.mxu0 %v511_v59  ;;  %v581_v55 = vld [vmem:[%s2199_s4 + $0x538] sm:$0xff]  ;;  %v596_v58 = vld [vmem:[%s2199_s4 + $0x5b0] sm:$0xff] }
 0x256   :  { %1207 = vmatprep.subr.mxu1 %v494_v60  ;;  %1245 = vmatprep.subr.mxu0 %v526_v61  ;;  %v548_v59 = vld [vmem:[%s2199_s4 + $0x430] sm:$0xff]  ;;  %v563_v61 = vld [vmem:[%s2199_s4 + $0x4a8] sm:$0xff] }
 0x257   :  { %1208 = vmatpush3.msra.mxu1 %v478_v5  ;;  %1246 = vmatpush3.msra.mxu0 %v510_v6  ;;  %v580_v60 = vld [vmem:[%s2199_s4 + $0x530] sm:$0xff]  ;;  %v594_v5 = vld [vmem:[%s2199_s4 + $0x5a0] sm:$0xff] }
 0x258   :  { %828 = vmatmul.mubr.f32.vlgmr.msra.gmra.mxu1 %v375_v11  ;;  %903 = vmatmul.mubr.f32.vlgmr.msra.gmra.mxu0 %v390_v12  ;;  %v546_v6 = vld [vmem:[%s2199_s4 + $0x420] sm:$0xff]  ;;  %v577_v11 = vld [vmem:[%s2199_s4 + $0x518] sm:$0xff]  ;;  %v560_v12 = vld [vmem:[%s2199_s4 + $0x490] sm:$0xff] }
 0x259   :  { %1253 = vmatprep.subr.mxu1 %v573_v36  ;;  %1291 = vmatprep.subr.mxu0 %v605_v10  ;;  %v593_v36 = vld [vmem:[%s2199_s4 + $0x598] sm:$0xff] }
 0x25a   :  { %832 = vmatprep.mubr.f32.mxu1 %v385_v15  ;;  %907 = vmatprep.mubr.f32.mxu0 %v400_v16  ;;  %v545_v10 = vld [vmem:[%s2199_s4 + $0x418] sm:$0xff]  ;;  %v576_v15 = vld [vmem:[%s2199_s4 + $0x510] sm:$0xff]  ;;  %v559_v16 = vld [vmem:[%s2199_s4 + $0x488] sm:$0xff] }
 0x25b   :  { %1254 = vmatpush3.msra.mxu1 %v557_v13  ;;  %1292 = vmatpush3.msra.mxu0 %v589_v14  ;;  %v592_v13 = vld [vmem:[%s2199_s4 + $0x590] sm:$0xff] }
 0x25c   :  { %1255 = vmatprep.subr.mxu1 %v572_v17  ;;  %1293 = vmatprep.subr.mxu0 %v604_v18  ;;  %v544_v14 = vld [vmem:[%s2199_s4 + $0x410] sm:$0xff]  ;;  %v591_v17 = vld [vmem:[%s2199_s4 + $0x588] sm:$0xff] }
 0x25d   :  { %1256 = vmatpush3.msra.mxu1 %v556_v57  ;;  %1294 = vmatpush3.msra.mxu0 %v588_v62  ;;  %v543_v18 = vld [vmem:[%s2199_s4 + $0x408] sm:$0xff]  ;;  %v590_v57 = vld [vmem:[%s2199_s4 + $0x580] sm:$0xff] }
 0x25e   :  { %833 = vmatmul.mubr.f32.gmra.mxu1 %v377_v28  ;;  %908 = vmatmul.mubr.f32.gmra.mxu0 %v392_v29  ;;  %v542_v62 = vld [vmem:[%s2199_s4 + $0x400] sm:$0xff] }
 0x25f   :  { %1257 = vmatprep.subr.mxu1 %v571_v24  ;;  %1295 = vmatprep.subr.mxu0 %v603_v25  ;;  %v574_v24 = vld [vmem:[%s2199_s4 + $0x500] sm:$0xff] }
 0x260   :  { %1258 = vmatpush3.msra.mxu1 %v555_v30  ;;  %977 = vmatprep.mubr.f32.mxu1 %v404_v32 }
 0x261   :  { %1296 = vmatpush3.msra.mxu0 %v587_v31  ;;  %1052 = vmatprep.mubr.f32.mxu0 %v1765_v50  ;;  %v568_v50 = vld [vmem:[%s2199_s4 + $0x4d0] sm:$0xff] }
 0x262   :  { %1259 = vmatprep.subr.mxu1 %v570_v33  ;;  %1297 = vmatprep.subr.mxu0 %v602_v34 }
 0x263   :  { %1260 = vmatpush3.msra.mxu1 %v554_v35  ;;  %1298 = vmatpush3.msra.mxu0 %v586_v20 }
 0x264   :  { %1261 = vmatprep.subr.mxu1 %v569_v26  ;;  %1299 = vmatprep.subr.mxu0 %v601_v27 }
 0x265   :  { %1262 = vmatpush3.msra.mxu1 %v553_v37  ;;  %1300 = vmatpush3.msra.mxu0 %v585_v38 }
 0x266   :  { %1263 = vmatprep.subr.mxu1 %v568_v50  ;;  %1301 = vmatprep.subr.mxu0 %v600_v39 }
 0x267   :  { %1264 = vmatpush3.msra.mxu1 %v552_v41  ;;  %1302 = vmatpush3.msra.mxu0 %v584_v42 }
 0x268   :  { %1265 = vmatprep.subr.mxu1 %v567_v43  ;;  %1303 = vmatprep.subr.mxu0 %v599_v44 }
 0x269   :  { %1266 = vmatpush3.msra.mxu1 %v551_v45  ;;  %1304 = vmatpush3.msra.mxu0 %v583_v46 }
 0x26a   :  { %1267 = vmatprep.subr.mxu1 %v566_v47  ;;  %1305 = vmatprep.subr.mxu0 %v598_v48 }
 0x26b   :  { %1268 = vmatpush3.msra.mxu1 %v550_v49  ;;  %1306 = vmatpush3.msra.mxu0 %v582_v51 }
 0x26c   :  { %1269 = vmatprep.subr.mxu1 %v565_v52  ;;  %1307 = vmatprep.subr.mxu0 %v597_v53 }
 0x26d   :  { %1270 = vmatpush3.msra.mxu1 %v549_v54  ;;  %1308 = vmatpush3.msra.mxu0 %v581_v55 }
 0x26e   :  { %1271 = vmatprep.subr.mxu1 %v564_v56  ;;  %1309 = vmatprep.subr.mxu0 %v596_v58 }
 0x26f   :  { %1272 = vmatpush3.msra.mxu1 %v548_v59  ;;  %1310 = vmatpush3.msra.mxu0 %v580_v60 }
 0x270   :  { %1273 = vmatprep.subr.mxu1 %v563_v61  ;;  %1311 = vmatprep.subr.mxu0 %v595_v63 }
 0x271   :  { %1274 = vmatpush3.msra.mxu1 %v547_v1  ;;  %1312 = vmatpush3.msra.mxu0 %v579_v2 }
 0x272   :  { %1275 = vmatprep.subr.mxu1 %v562_v3  ;;  %1313 = vmatprep.subr.mxu0 %v594_v5 }
 0x273   :  { %1276 = vmatpush3.msra.mxu1 %v546_v6  ;;  %1314 = vmatpush3.msra.mxu0 %v578_v7 }
 0x274   :  { %1277 = vmatprep.subr.mxu1 %v561_v9  ;;  %1315 = vmatprep.subr.mxu0 %v593_v36 }
 0x275   :  { %1278 = vmatpush3.msra.mxu1 %v545_v10  ;;  %1316 = vmatpush3.msra.mxu0 %v577_v11 }
 0x276   :  { %1279 = vmatprep.subr.mxu1 %v560_v12  ;;  %1317 = vmatprep.subr.mxu0 %v592_v13 }
 0x277   :  { %1280 = vmatpush3.msra.mxu1 %v544_v14  ;;  %1318 = vmatpush3.msra.mxu0 %v576_v15 }
 0x278   :  { %1281 = vmatprep.subr.mxu1 %v559_v16  ;;  %1319 = vmatprep.subr.mxu0 %v591_v17 }
 0x279   :  { %1282 = vmatpush3.msra.mxu1 %v543_v18  ;;  %1320 = vmatpush3.msra.mxu0 %v575_v19 }
 0x27a   :  { %1283 = vmatprep.subr.mxu1 %v558_v21  ;;  %1321 = vmatprep.subr.mxu0 %v590_v57 }
 0x27b   :  { %1284 = vmatpush3.msra.mxu1 %v542_v62  ;;  %1322 = vmatpush3.msra.mxu0 %v574_v24 }
 0x27c   :  { %978 = vmatmul.mubr.f32.vlgmr.msra.gmra.mxu1 %v1734_v22  ;;  %1053 = vmatmul.mubr.f32.vlgmr.msra.gmra.mxu0 %v1793_v0 }
 0x27d   :  { %982 = vmatprep.mubr.f32.mxu1 %v403_v23  ;;  %1057 = vmatprep.mubr.f32.mxu0 %v1804_v4 }
 0x280   :  { %983 = vmatmul.mubr.f32.gmra.mxu1 %v1744_v40  ;;  %1058 = vmatmul.mubr.f32.gmra.mxu0 %v1816_v8  ;;  %v1082_v40 = vld [vmem:[%s2200_s5] ss:$0 sm:$0xff] }
 0x2f5   :  { %v1133_v25 = vpop.f32.mrf.mxu1  ;;  %v1171_v28 = vpop.f32.mrf.mxu0 }
 0x2f7   :  { %v1134_v29 = vpop.f32.mrf.mxu1  ;;  %v1172_v30 = vpop.f32.mrf.mxu0 }
 0x2f8   :  { %v1135_v23 = vadd.f32 %v1134_v29, %v1133_v25  ;;  %v1173_v39 = vadd.f32 %v1172_v30, %v1171_v28 }
 0x2fa   :  { %v680_v37 = vadd.f32 %v1135_v23, %v1082_v40 }
 0x2fb   :  { %v1136_v31 = vpop.f32.mrf.mxu1  ;;  %v1174_v32 = vpop.f32.mrf.mxu0 }
 0x2fc   :  { %v755_v46 = vadd.f32 %v1173_v39, %v680_v37 }
 0x2fd   :  { %v1137_v33 = vpop.f32.mrf.mxu1  ;;  %v1175_v34 = vpop.f32.mrf.mxu0 }
 0x2fe   :  { %v1138_v27 = vadd.f32 %v1137_v33, %v1136_v31  ;;  %v1176_v41 = vadd.f32 %v1175_v34, %v1174_v32 }
 0x300   :  { %v685_v38 = vadd.f32 %v1138_v27, %v1082_v40 }
 0x302   :  { %v760_v47 = vadd.f32 %v1176_v41, %v685_v38 }
 0x318   :  { %v1209_v22 = vpop.f32.mrf.mxu1  ;;  %v1247_v35 = vpop.f32.mrf.mxu0 }
 0x31a   :  { %v1210_v0 = vpop.f32.mrf.mxu1  ;;  %v1248_v20 = vpop.f32.mrf.mxu0 }
 0x31b   :  { %v1211_v42 = vadd.f32 %v1210_v0, %v1209_v22  ;;  %v1249_v55 = vadd.f32 %v1248_v20, %v1247_v35 }
 0x31d   :  { %v830_v51 = vadd.f32 %v1211_v42, %v755_v46 }
 0x31e   :  { %v1212_v26 = vpop.f32.mrf.mxu1  ;;  %v1250_v4 = vpop.f32.mrf.mxu0 }
 0x31f   :  { %v905_v61 = vadd.f32 %v1249_v55, %v830_v51 }
 0x320   :  { %v1213_v8 = vpop.f32.mrf.mxu1  ;;  %v1251_v50 = vpop.f32.mrf.mxu0 }
 0x321   :  { %v1214_v43 = vadd.f32 %v1213_v8, %v1212_v26  ;;  %v1252_v56 = vadd.f32 %v1251_v50, %v1250_v4 }
 0x323   :  { %v835_v52 = vadd.f32 %v1214_v43, %v760_v47 }
 0x325   :  { %v910_v63 = vadd.f32 %v1252_v56, %v835_v52 }
 0x33c   :  { %v1285_v44 = vpop.f32.mrf.mxu1  ;;  %v1323_v45 = vpop.f32.mrf.mxu0 }
 0x33e   :  { %v1286_v48 = vpop.f32.mrf.mxu1  ;;  %v1324_v49 = vpop.f32.mrf.mxu0 }
 0x33f   :  { %v1287_v58 = vadd.f32 %v1286_v48, %v1285_v44  ;;  %v1325_v6 = vadd.f32 %v1324_v49, %v1323_v45 }
 0x340   :  { %v1288_v53 = vpop.f32.mrf.mxu1  ;;  %v1326_v54 = vpop.f32.mrf.mxu0 }
 0x341   :  { %v980_v2 = vadd.f32 %v1287_v58, %v905_v61 }
 0x342   :  { %v1289_v59 = vpop.f32.mrf.mxu1  ;;  %v1327_v60 = vpop.f32.mrf.mxu0 }
 0x343   :  { %v1290_v1 = vadd.f32 %v1289_v59, %v1288_v53  ;;  %v1328_v5 = vadd.f32 %v1327_v60, %v1326_v54  ;;  %v1055_v9 = vadd.f32 %v1325_v6, %v980_v2 }
 0x345   :  { %v985_v3 = vadd.f32 %v1290_v1, %v910_v63 }
 0x347   :  { %v1060_v7 = vadd.f32 %v1328_v5, %v985_v3 }
 0x349   :  { %v1064_v36 = vrot.slane %v1060_v7, 3 }
 0x34b   :  { %v1066_v10 = vsel %vm181_vm4, %v1055_v9, %v1064_v36 }
 0x34c   :  { %1067 = vst [vmem:[%s2201_s6] sm:$0xf] %v1066_v10 }
 0x34d   :  { %1072 = vsyncpa [#allocation3], 1 }

</bundles_post_ra>
